<compile_context>
chip_gen: v7x
topology: tpu7x:2x2x1
jax: 0.10.0
libtpu: 0.0.40
codegen_flags: <defaults>
</compile_context>

<pallas_src>
import functools
import math

import jax
import jax.numpy as jnp
from jax import lax
from jax.experimental import pallas as pl
from jax.experimental.pallas import tpu as pltpu


def _layernorm(v, gamma, beta, eps=1e-5):
    mu = jnp.mean(v, axis=-1, keepdims=True)
    var = jnp.mean((v - mu) ** 2, axis=-1, keepdims=True)
    return (v - mu) * lax.rsqrt(var + eps) * gamma + beta


# ---------------------------------------------------------------------------
# Kernel 1: LayerNorm0 + packed QKV projection -> head-major bf16 q/k/v
# ---------------------------------------------------------------------------
def qkv_kernel(x_ref, ln0_g_ref, ln0_b_ref, wqkv_ref, bqkv_ref,
               q_ref, k_ref, v_ref, *, num_heads, head_dim, scale):
    x = x_ref[0].astype(jnp.float32)                       # (ts, D)
    D = x.shape[1]
    h = _layernorm(x, ln0_g_ref[0], ln0_b_ref[0])
    hb = h.astype(jnp.bfloat16)
    # one packed (ts, D) @ (D, 3D) matmul, bf16 operands, f32 accumulate
    qkv = jnp.dot(hb, wqkv_ref[...], preferred_element_type=jnp.float32)
    qkv = qkv + bqkv_ref[0]
    q = qkv[:, :D] * scale          # fold softmax scale into q (once)
    k = qkv[:, D:2 * D]
    v = qkv[:, 2 * D:]
    # Split into head-major layout ONCE here so the attention kernel never
    # has to transpose / concatenate per (q-tile, kv-tile) step.
    for hh in range(num_heads):
        lo = hh * head_dim
        hi = lo + head_dim
        q_ref[0, hh, :, :] = q[:, lo:hi].astype(jnp.bfloat16)
        k_ref[0, hh, :, :] = k[:, lo:hi].astype(jnp.bfloat16)
        v_ref[0, hh, :, :] = v[:, lo:hi].astype(jnp.bfloat16)


# ---------------------------------------------------------------------------
# Kernel 2: flash attention + output proj + residual + LN1 + chunked FFN
# ---------------------------------------------------------------------------
def attn_ffn_kernel(x_ref, q_ref, k_ref, v_ref, wo_ref, bo_ref,
                    ln1_g_ref, ln1_b_ref, w1_ref, b1_ref, w2_ref, b2_ref,
                    o_ref, m_sc, l_sc, acc_sc,
                    *, num_heads, causal, q_tile, kv_tile, ff_chunk):
    kv_idx = pl.program_id(2)
    nkv = pl.num_programs(2)

    @pl.when(kv_idx == 0)
    def _():
        m_sc[...] = jnp.full_like(m_sc, -jnp.inf)
        l_sc[...] = jnp.zeros_like(l_sc)
        acc_sc[...] = jnp.zeros_like(acc_sc)

    qb = q_ref[0]          # (H, tq, dh) bf16, pre-scaled
    kb = k_ref[0]          # (H, tk, dh) bf16
    vb = v_ref[0]          # (H, tk, dh) bf16

    # Heads batched in a single einsum -> MXU, f32 accumulation.
    s = jnp.einsum("hqd,hkd->hqk", qb, kb,
                   preferred_element_type=jnp.float32)      # (H, tq, tk)

    if causal:
        # Mask built once per kv step (not per head).  Masking happens after
        # the f32 accumulate, so -1e30 is safe.
        # TODO(synk): kv tiles strictly above the diagonal could be skipped
        # entirely with pl.when instead of computed-and-masked.
        q0 = pl.program_id(1) * q_tile
        k0 = kv_idx * kv_tile
        row = q0 + lax.broadcasted_iota(jnp.int32, (q_tile, kv_tile), 0)
        col = k0 + lax.broadcasted_iota(jnp.int32, (q_tile, kv_tile), 1)
        s = jnp.where((col <= row)[None, :, :], s, jnp.float32(-1e30))

    # Online softmax update (all f32, elementwise on VPU/EUP).
    m_prev = m_sc[...]
    m_new = jnp.maximum(m_prev, jnp.max(s, axis=-1, keepdims=True))
    alpha = jnp.exp(m_prev - m_new)
    p = jnp.exp(s - m_new)
    l_sc[...] = alpha * l_sc[...] + jnp.sum(p, axis=-1, keepdims=True)
    acc_sc[...] = alpha * acc_sc[...] + jnp.einsum(
        "hqk,hkd->hqd", p.astype(jnp.bfloat16), vb,
        preferred_element_type=jnp.float32)
    m_sc[...] = m_new

    @pl.when(kv_idx == nkv - 1)
    def _():
        x = x_ref[0].astype(jnp.float32)                    # (tq, D)
        D = x.shape[1]
        # Normalize once at the end; approx reciprocal runs on the EUP.
        attn = acc_sc[...] * pl.reciprocal(l_sc[...], approx=True)  # (H,tq,dh)
        # Output projection without concatenating heads:
        #   concat_h(head_h) @ Wo  ==  sum_h head_h @ Wo[h*dh:(h+1)*dh, :]
        proj = jnp.zeros((q_tile, D), jnp.float32)
        for hh in range(num_heads):
            proj = proj + jnp.dot(attn[hh].astype(jnp.bfloat16), wo_ref[hh],
                                  preferred_element_type=jnp.float32)
        x1 = x + proj + bo_ref[0]

        # ---- sublayer 1: LayerNorm -> FFN (chunked over dim_ff) -> residual
        h1 = _layernorm(x1, ln1_g_ref[0], ln1_b_ref[0])
        h1b = h1.astype(jnp.bfloat16)
        ffn = jnp.zeros((q_tile, D), jnp.float32)
        FF = w1_ref.shape[1]
        for c in range(FF // ff_chunk):
            lo = c * ff_chunk
            hi = lo + ff_chunk
            t = jnp.dot(h1b, w1_ref[:, lo:hi],
                        preferred_element_type=jnp.float32) + b1_ref[0, lo:hi]
            t = jnp.maximum(t, 0.0)                         # ReLU
            ffn = ffn + jnp.dot(t.astype(jnp.bfloat16), w2_ref[lo:hi, :],
                                preferred_element_type=jnp.float32)
        o_ref[0] = (x1 + ffn + b2_ref[0]).astype(o_ref.dtype)


# ---------------------------------------------------------------------------
# Wrapper
# ---------------------------------------------------------------------------
def encoder_block(x, params, *, num_heads, causal=False,
                  seq_tile=256, q_tile=256, kv_tile=256, ff_chunk=512):
    """x: (B, S, D) float32.  params: dict of f32 weights (see init_params)."""
    B, S, D = x.shape
    FF = params["w1"].shape[1]
    assert D % num_heads == 0
    dh = D // num_heads
    seq_tile = min(seq_tile, S)
    q_tile = min(q_tile, S)
    kv_tile = min(kv_tile, S)
    ff_chunk = min(ff_chunk, FF)
    assert S % seq_tile == 0 and S % q_tile == 0 and S % kv_tile == 0
    assert FF % ff_chunk == 0
    # NOTE: best performance when D, dh, tiles are multiples of (8, 128);
    # other sizes are correct but use masked/partial vregs.

    bf16 = jnp.bfloat16
    scale = 1.0 / math.sqrt(dh)
    # Pack QKV weights into one matrix (one big matmul in kernel 1) and cast
    # all matmul weights to bf16 once (halves weight VMEM / DMA traffic).
    wqkv = jnp.concatenate(
        [params["wq"], params["wk"], params["wv"]], axis=1).astype(bf16)
    bqkv = jnp.concatenate([params["bq"], params["bk"], params["bv"]], axis=1)
    wo_h = params["wo"].reshape(num_heads, dh, D).astype(bf16)
    w1 = params["w1"].astype(bf16)
    w2 = params["w2"].astype(bf16)

    vmem_limit = 48 * 1024 * 1024
    # ---------------- kernel 1: LN0 + QKV projection ----------------
    qkv_out = jax.ShapeDtypeStruct((B, num_heads, S, dh), bf16)
    hs_spec = pl.BlockSpec((1, num_heads, seq_tile, dh), lambda b, s: (b, 0, s, 0))
    q, k, v = pl.pallas_call(
        functools.partial(qkv_kernel, num_heads=num_heads, head_dim=dh,
                          scale=scale),
        out_shape=(qkv_out, qkv_out, qkv_out),
        grid_spec=pltpu.PrefetchScalarGridSpec(
            num_scalar_prefetch=0,
            grid=(B, S // seq_tile),
            in_specs=[
                pl.BlockSpec((1, seq_tile, D), lambda b, s: (b, s, 0)),  # x
                pl.BlockSpec((1, D), lambda b, s: (0, 0)),               # ln0_g
                pl.BlockSpec((1, D), lambda b, s: (0, 0)),               # ln0_b
                pl.BlockSpec((D, 3 * D), lambda b, s: (0, 0)),           # wqkv
                pl.BlockSpec((1, 3 * D), lambda b, s: (0, 0)),           # bqkv
            ],
            out_specs=[hs_spec, hs_spec, hs_spec],
        ),
        compiler_params=pltpu.CompilerParams(
            dimension_semantics=("parallel", "parallel"),
            vmem_limit_bytes=vmem_limit),
        cost_estimate=pl.CostEstimate(
            flops=2 * B * S * D * 3 * D,
            transcendentals=B * S,
            bytes_accessed=B * S * D * 4 + D * 3 * D * 2 + 3 * B * S * D * 2),
    )(x, params["ln0_g"], params["ln0_b"], wqkv, bqkv)

    # ---------------- kernel 2: attention + FFN ----------------
    nq = S // q_tile
    nkv = S // kv_tile
    flops2 = 4 * B * S * S * D + 2 * B * S * D * D + 4 * B * S * D * FF
    bytes2 = (2 * B * S * D * 4 + 3 * B * S * D * 2
              + (D * D + 2 * D * FF) * 2 + (3 * D + FF) * 4)
    out = pl.pallas_call(
        functools.partial(attn_ffn_kernel, num_heads=num_heads, causal=causal,
                          q_tile=q_tile, kv_tile=kv_tile, ff_chunk=ff_chunk),
        out_shape=jax.ShapeDtypeStruct((B, S, D), x.dtype),
        grid_spec=pltpu.PrefetchScalarGridSpec(
            num_scalar_prefetch=0,
            grid=(B, nq, nkv),
            in_specs=[
                pl.BlockSpec((1, q_tile, D), lambda b, qi, kv: (b, qi, 0)),            # x
                pl.BlockSpec((1, num_heads, q_tile, dh), lambda b, qi, kv: (b, 0, qi, 0)),   # q
                pl.BlockSpec((1, num_heads, kv_tile, dh), lambda b, qi, kv: (b, 0, kv, 0)),  # k
                pl.BlockSpec((1, num_heads, kv_tile, dh), lambda b, qi, kv: (b, 0, kv, 0)),  # v
                pl.BlockSpec((num_heads, dh, D), lambda b, qi, kv: (0, 0, 0)),         # wo
                pl.BlockSpec((1, D), lambda b, qi, kv: (0, 0)),                        # bo
                pl.BlockSpec((1, D), lambda b, qi, kv: (0, 0)),                        # ln1_g
                pl.BlockSpec((1, D), lambda b, qi, kv: (0, 0)),                        # ln1_b
                pl.BlockSpec((D, FF), lambda b, qi, kv: (0, 0)),                       # w1
                pl.BlockSpec((1, FF), lambda b, qi, kv: (0, 0)),                       # b1
                pl.BlockSpec((FF, D), lambda b, qi, kv: (0, 0)),                       # w2
                pl.BlockSpec((1, D), lambda b, qi, kv: (0, 0)),                        # b2
            ],
            out_specs=pl.BlockSpec((1, q_tile, D), lambda b, qi, kv: (b, qi, 0)),
            scratch_shapes=[
                pltpu.VMEM((num_heads, q_tile, 1), jnp.float32),   # running max
                pltpu.VMEM((num_heads, q_tile, 1), jnp.float32),   # running denom
                pltpu.VMEM((num_heads, q_tile, dh), jnp.float32),  # running acc
            ],
        ),
        compiler_params=pltpu.CompilerParams(
            dimension_semantics=("parallel", "parallel", "arbitrary"),
            vmem_limit_bytes=vmem_limit),
        cost_estimate=pl.CostEstimate(
            flops=flops2,
            transcendentals=B * num_heads * S * S + 2 * B * S,
            bytes_accessed=bytes2),
    )(x, q, k, v, wo_h, params["bo"], params["ln1_g"], params["ln1_b"],
      w1, params["b1"], w2, params["b2"])
    return out


def init_params(key, dim_embed: int, dim_ff: int):
    ks = jax.random.split(key, 8)
    s_e = 1.0 / math.sqrt(dim_embed)
    s_f = 1.0 / math.sqrt(dim_ff)
    f32 = jnp.float32
    return {
        "ln0_g": jnp.ones((1, dim_embed), f32),
        "ln0_b": jnp.zeros((1, dim_embed), f32),
        "wq": jax.random.normal(ks[0], (dim_embed, dim_embed), f32) * s_e,
        "bq": jnp.zeros((1, dim_embed), f32),
        "wk": jax.random.normal(ks[1], (dim_embed, dim_embed), f32) * s_e,
        "bk": jnp.zeros((1, dim_embed), f32),
        "wv": jax.random.normal(ks[2], (dim_embed, dim_embed), f32) * s_e,
        "bv": jnp.zeros((1, dim_embed), f32),
        "wo": jax.random.normal(ks[3], (dim_embed, dim_embed), f32) * s_e,
        "bo": jnp.zeros((1, dim_embed), f32),
        "ln1_g": jnp.ones((1, dim_embed), f32),
        "ln1_b": jnp.zeros((1, dim_embed), f32),
        "w1": jax.random.normal(ks[4], (dim_embed, dim_ff), f32) * s_e,
        "b1": jnp.zeros((1, dim_ff), f32),
        "w2": jax.random.normal(ks[5], (dim_ff, dim_embed), f32) * s_f,
        "b2": jnp.zeros((1, dim_embed), f32),
    }


def _reference(x, p, num_heads, causal):
    """Plain-JAX reference mirroring the kernel's bf16-operand / f32-accum math."""
    bf16 = jnp.bfloat16
    dot = functools.partial(jnp.einsum, preferred_element_type=jnp.float32)

    def ln(v, g, b):
        mu = v.mean(-1, keepdims=True)
        var = ((v - mu) ** 2).mean(-1, keepdims=True)
        return (v - mu) / jnp.sqrt(var + 1e-5) * g + b

    B, S, D = x.shape
    dh = D // num_heads
    scale = 1.0 / math.sqrt(dh)
    h = ln(x, p["ln0_g"][0], p["ln0_b"][0]).astype(bf16)
    q = (dot("bsd,de->bse", h, p["wq"].astype(bf16)) + p["bq"][0]) * scale
    k = dot("bsd,de->bse", h, p["wk"].astype(bf16)) + p["bk"][0]
    v = dot("bsd,de->bse", h, p["wv"].astype(bf16)) + p["bv"][0]
    qh = q.reshape(B, S, num_heads, dh).transpose(0, 2, 1, 3).astype(bf16)
    kh = k.reshape(B, S, num_heads, dh).transpose(0, 2, 1, 3).astype(bf16)
    vh = v.reshape(B, S, num_heads, dh).transpose(0, 2, 1, 3).astype(bf16)
    s = dot("bhqd,bhkd->bhqk", qh, kh)
    if causal:
        mask = jnp.tril(jnp.ones((S, S), bool))
        s = jnp.where(mask, s, jnp.float32(-1e30))
    m = s.max(-1, keepdims=True)
    pexp = jnp.exp(s - m)
    l = pexp.sum(-1, keepdims=True)
    o = dot("bhqk,bhkd->bhqd", pexp.astype(bf16), vh) / l
    o = o.transpose(0, 2, 1, 3).reshape(B, S, D).astype(bf16)
    x1 = x + dot("bsd,de->bse", o, p["wo"].astype(bf16)) + p["bo"][0]
    h1 = ln(x1, p["ln1_g"][0], p["ln1_b"][0]).astype(bf16)
    f1 = jnp.maximum(dot("bsd,df->bsf", h1, p["w1"].astype(bf16)) + p["b1"][0], 0.0)
    f2 = dot("bsf,fd->bsd", f1.astype(bf16), p["w2"].astype(bf16)) + p["b2"][0]
    return x1 + f2


if __name__ == "__main__":
    B, S, D, FF, H = 2, 16, 32, 64, 4
    key = jax.random.PRNGKey(0)
    kx, kp = jax.random.split(key)
    x = jax.random.normal(kx, (B, S, D), jnp.float32)
    params = init_params(kp, D, FF)

    for causal in (False, True):
        out = encoder_block(x, params, num_heads=H, causal=causal,
                            seq_tile=8, q_tile=8, kv_tile=8, ff_chunk=32)
        out = jax.block_until_ready(out)
        ref = _reference(x, params, H, causal)
        assert out.shape == (B, S, D)
        err = float(jnp.max(jnp.abs(out - ref)))
        assert jnp.allclose(out, ref, atol=1e-2, rtol=1e-2), (
            f"mismatch vs JAX reference (causal={causal}, max err={err})")
    print("KERNEL_OK")
</pallas_src>

<mosaic_0001>
module attributes {stable_mosaic.version = 11 : i64} {
  func.func @qkv_kernel(%arg0: i32, %arg1: i32, %arg2: memref<1x8x32xf32, #tpu.memory_space<vmem>>, %arg3: memref<1x32xf32, #tpu.memory_space<vmem>>, %arg4: memref<1x32xf32, #tpu.memory_space<vmem>>, %arg5: memref<32x96xbf16, #tpu.memory_space<vmem>>, %arg6: memref<1x96xf32, #tpu.memory_space<vmem>>, %arg7: memref<1x4x8x8xbf16, #tpu.memory_space<vmem>>, %arg8: memref<1x4x8x8xbf16, #tpu.memory_space<vmem>>, %arg9: memref<1x4x8x8xbf16, #tpu.memory_space<vmem>>) attributes {dimension_semantics = [#tpu.dimension_semantics<parallel>, #tpu.dimension_semantics<parallel>], iteration_bounds = array<i64: 2, 2>, scalar_prefetch = 0 : i64, scratch_operands = 0 : i64, tpu.core_type = #tpu.core_type<tc>, window_params = [{transform_indices = @transform_0, window_bounds = array<i64: 1, 8, 32>}, {pipeline_mode = #tpu.pipeline_mode<synchronous>, transform_indices = @transform_1, window_bounds = array<i64: 1, 32>}, {pipeline_mode = #tpu.pipeline_mode<synchronous>, transform_indices = @transform_2, window_bounds = array<i64: 1, 32>}, {pipeline_mode = #tpu.pipeline_mode<synchronous>, transform_indices = @transform_3, window_bounds = array<i64: 32, 96>}, {pipeline_mode = #tpu.pipeline_mode<synchronous>, transform_indices = @transform_4, window_bounds = array<i64: 1, 96>}, {transform_indices = @transform_5, window_bounds = array<i64: 1, 4, 8, 8>}, {transform_indices = @transform_6, window_bounds = array<i64: 1, 4, 8, 8>}, {transform_indices = @transform_7, window_bounds = array<i64: 1, 4, 8, 8>}]} {
    %c0 = arith.constant 0 : index
    %c0_0 = arith.constant 0 : index
    %c0_1 = arith.constant 0 : index
    %0 = vector.load %arg2[%c0, %c0_0, %c0_1] : memref<1x8x32xf32, #tpu.memory_space<vmem>>, vector<1x8x32xf32>
    %1 = vector.shape_cast %0 : vector<1x8x32xf32> to vector<8x32xf32>
    %c0_2 = arith.constant 0 : index
    %c0_3 = arith.constant 0 : index
    %2 = vector.load %arg3[%c0_2, %c0_3] : memref<1x32xf32, #tpu.memory_space<vmem>>, vector<1x32xf32>
    %3 = vector.shape_cast %2 : vector<1x32xf32> to vector<32xf32>
    %c0_4 = arith.constant 0 : index
    %c0_5 = arith.constant 0 : index
    %4 = vector.load %arg4[%c0_4, %c0_5] : memref<1x32xf32, #tpu.memory_space<vmem>>, vector<1x32xf32>
    %5 = vector.shape_cast %4 : vector<1x32xf32> to vector<32xf32>
    %cst = arith.constant dense<0.000000e+00> : vector<8xf32>
    %6 = vector.multi_reduction <add>, %1, %cst [1] : vector<8x32xf32> to vector<8xf32>
    %7 = vector.shape_cast %6 : vector<8xf32> to vector<8x1xf32>
    %cst_6 = arith.constant 3.200000e+01 : f32
    %8 = vector.broadcast %cst_6 : f32 to vector<8x1xf32>
    %9 = arith.divf %7, %8 : vector<8x1xf32>
    %10 = vector.broadcast %9 : vector<8x1xf32> to vector<8x32xf32>
    %11 = arith.subf %1, %10 : vector<8x32xf32>
    %12 = arith.mulf %11, %11 : vector<8x32xf32>
    %cst_7 = arith.constant dense<0.000000e+00> : vector<8xf32>
    %13 = vector.multi_reduction <add>, %12, %cst_7 [1] : vector<8x32xf32> to vector<8xf32>
    %14 = vector.shape_cast %13 : vector<8xf32> to vector<8x1xf32>
    %cst_8 = arith.constant 3.200000e+01 : f32
    %15 = vector.broadcast %cst_8 : f32 to vector<8x1xf32>
    %16 = arith.divf %14, %15 : vector<8x1xf32>
    %17 = vector.broadcast %9 : vector<8x1xf32> to vector<8x32xf32>
    %18 = arith.subf %1, %17 : vector<8x32xf32>
    %cst_9 = arith.constant 9.99999974E-6 : f32
    %19 = vector.broadcast %cst_9 : f32 to vector<8x1xf32>
    %20 = arith.addf %16, %19 : vector<8x1xf32>
    %21 = math.rsqrt %20 : vector<8x1xf32>
    %22 = vector.broadcast %21 : vector<8x1xf32> to vector<8x32xf32>
    %23 = arith.mulf %18, %22 : vector<8x32xf32>
    %24 = vector.shape_cast %3 : vector<32xf32> to vector<1x32xf32>
    %25 = vector.broadcast %24 : vector<1x32xf32> to vector<8x32xf32>
    %26 = arith.mulf %23, %25 : vector<8x32xf32>
    %27 = vector.shape_cast %5 : vector<32xf32> to vector<1x32xf32>
    %28 = vector.broadcast %27 : vector<1x32xf32> to vector<8x32xf32>
    %29 = arith.addf %26, %28 : vector<8x32xf32>
    %30 = arith.truncf %29 : vector<8x32xf32> to vector<8x32xbf16>
    %c0_10 = arith.constant 0 : index
    %c0_11 = arith.constant 0 : index
    %31 = vector.load %arg5[%c0_10, %c0_11] : memref<32x96xbf16, #tpu.memory_space<vmem>>, vector<32x96xbf16>
    %cst_12 = arith.constant dense<0.000000e+00> : vector<8x96xf32>
    %32 = tpu.matmul %30, %31, %cst_12 {dimension_numbers = #tpu.dot_dimension_numbers<[1], [0], [0], [1], [0, 0, 1, 1], [], []>} : vector<8x32xbf16>, vector<32x96xbf16>, vector<8x96xf32> -> vector<8x96xf32>
    %c0_13 = arith.constant 0 : index
    %c0_14 = arith.constant 0 : index
    %33 = vector.load %arg6[%c0_13, %c0_14] : memref<1x96xf32, #tpu.memory_space<vmem>>, vector<1x96xf32>
    %34 = vector.shape_cast %33 : vector<1x96xf32> to vector<96xf32>
    %35 = vector.shape_cast %34 : vector<96xf32> to vector<1x96xf32>
    %36 = vector.broadcast %35 : vector<1x96xf32> to vector<8x96xf32>
    %37 = arith.addf %32, %36 : vector<8x96xf32>
    %38 = vector.extract_strided_slice %37 {offsets = [0, 0], sizes = [8, 32], strides = [1, 1]} : vector<8x96xf32> to vector<8x32xf32>
    %cst_15 = arith.constant 0.353553385 : f32
    %39 = vector.broadcast %cst_15 : f32 to vector<8x32xf32>
    %40 = arith.mulf %38, %39 : vector<8x32xf32>
    %41 = vector.extract_strided_slice %37 {offsets = [0, 32], sizes = [8, 32], strides = [1, 1]} : vector<8x96xf32> to vector<8x32xf32>
    %42 = vector.extract_strided_slice %37 {offsets = [0, 64], sizes = [8, 32], strides = [1, 1]} : vector<8x96xf32> to vector<8x32xf32>
    %43 = vector.extract_strided_slice %40 {offsets = [0, 0], sizes = [8, 8], strides = [1, 1]} : vector<8x32xf32> to vector<8x8xf32>
    %44 = arith.truncf %43 : vector<8x8xf32> to vector<8x8xbf16>
    %c0_16 = arith.constant 0 : index
    %c0_17 = arith.constant 0 : index
    %c0_18 = arith.constant 0 : index
    %c0_19 = arith.constant 0 : index
    %45 = vector.load %arg7[%c0_16, %c0_17, %c0_18, %c0_19] : memref<1x4x8x8xbf16, #tpu.memory_space<vmem>>, vector<1x1x8x8xbf16>
    %46 = vector.shape_cast %45 : vector<1x1x8x8xbf16> to vector<8x8xbf16>
    %47 = vector.shape_cast %44 : vector<8x8xbf16> to vector<1x1x8x8xbf16>
    tpu.vector_store %arg7[%c0_16, %c0_17, %c0_18, %c0_19], %47 {strides = array<i32>} : memref<1x4x8x8xbf16, #tpu.memory_space<vmem>>, vector<1x1x8x8xbf16>,
    %48 = vector.extract_strided_slice %41 {offsets = [0, 0], sizes = [8, 8], strides = [1, 1]} : vector<8x32xf32> to vector<8x8xf32>
    %49 = arith.truncf %48 : vector<8x8xf32> to vector<8x8xbf16>
    %c0_20 = arith.constant 0 : index
    %c0_21 = arith.constant 0 : index
    %c0_22 = arith.constant 0 : index
    %c0_23 = arith.constant 0 : index
    %50 = vector.load %arg8[%c0_20, %c0_21, %c0_22, %c0_23] : memref<1x4x8x8xbf16, #tpu.memory_space<vmem>>, vector<1x1x8x8xbf16>
    %51 = vector.shape_cast %50 : vector<1x1x8x8xbf16> to vector<8x8xbf16>
    %52 = vector.shape_cast %49 : vector<8x8xbf16> to vector<1x1x8x8xbf16>
    tpu.vector_store %arg8[%c0_20, %c0_21, %c0_22, %c0_23], %52 {strides = array<i32>} : memref<1x4x8x8xbf16, #tpu.memory_space<vmem>>, vector<1x1x8x8xbf16>,
    %53 = vector.extract_strided_slice %42 {offsets = [0, 0], sizes = [8, 8], strides = [1, 1]} : vector<8x32xf32> to vector<8x8xf32>
    %54 = arith.truncf %53 : vector<8x8xf32> to vector<8x8xbf16>
    %c0_24 = arith.constant 0 : index
    %c0_25 = arith.constant 0 : index
    %c0_26 = arith.constant 0 : index
    %c0_27 = arith.constant 0 : index
    %55 = vector.load %arg9[%c0_24, %c0_25, %c0_26, %c0_27] : memref<1x4x8x8xbf16, #tpu.memory_space<vmem>>, vector<1x1x8x8xbf16>
    %56 = vector.shape_cast %55 : vector<1x1x8x8xbf16> to vector<8x8xbf16>
    %57 = vector.shape_cast %54 : vector<8x8xbf16> to vector<1x1x8x8xbf16>
    tpu.vector_store %arg9[%c0_24, %c0_25, %c0_26, %c0_27], %57 {strides = array<i32>} : memref<1x4x8x8xbf16, #tpu.memory_space<vmem>>, vector<1x1x8x8xbf16>,
    %58 = vector.extract_strided_slice %40 {offsets = [0, 8], sizes = [8, 8], strides = [1, 1]} : vector<8x32xf32> to vector<8x8xf32>
    %59 = arith.truncf %58 : vector<8x8xf32> to vector<8x8xbf16>
    %c0_28 = arith.constant 0 : index
    %c1 = arith.constant 1 : index
    %c0_29 = arith.constant 0 : index
    %c0_30 = arith.constant 0 : index
    %60 = vector.load %arg7[%c0_28, %c1, %c0_29, %c0_30] : memref<1x4x8x8xbf16, #tpu.memory_space<vmem>>, vector<1x1x8x8xbf16>
    %61 = vector.shape_cast %60 : vector<1x1x8x8xbf16> to vector<8x8xbf16>
    %62 = vector.shape_cast %59 : vector<8x8xbf16> to vector<1x1x8x8xbf16>
    tpu.vector_store %arg7[%c0_28, %c1, %c0_29, %c0_30], %62 {strides = array<i32>} : memref<1x4x8x8xbf16, #tpu.memory_space<vmem>>, vector<1x1x8x8xbf16>,
    %63 = vector.extract_strided_slice %41 {offsets = [0, 8], sizes = [8, 8], strides = [1, 1]} : vector<8x32xf32> to vector<8x8xf32>
    %64 = arith.truncf %63 : vector<8x8xf32> to vector<8x8xbf16>
    %c0_31 = arith.constant 0 : index
    %c1_32 = arith.constant 1 : index
    %c0_33 = arith.constant 0 : index
    %c0_34 = arith.constant 0 : index
    %65 = vector.load %arg8[%c0_31, %c1_32, %c0_33, %c0_34] : memref<1x4x8x8xbf16, #tpu.memory_space<vmem>>, vector<1x1x8x8xbf16>
    %66 = vector.shape_cast %65 : vector<1x1x8x8xbf16> to vector<8x8xbf16>
    %67 = vector.shape_cast %64 : vector<8x8xbf16> to vector<1x1x8x8xbf16>
    tpu.vector_store %arg8[%c0_31, %c1_32, %c0_33, %c0_34], %67 {strides = array<i32>} : memref<1x4x8x8xbf16, #tpu.memory_space<vmem>>, vector<1x1x8x8xbf16>,
    %68 = vector.extract_strided_slice %42 {offsets = [0, 8], sizes = [8, 8], strides = [1, 1]} : vector<8x32xf32> to vector<8x8xf32>
    %69 = arith.truncf %68 : vector<8x8xf32> to vector<8x8xbf16>
    %c0_35 = arith.constant 0 : index
    %c1_36 = arith.constant 1 : index
    %c0_37 = arith.constant 0 : index
    %c0_38 = arith.constant 0 : index
    %70 = vector.load %arg9[%c0_35, %c1_36, %c0_37, %c0_38] : memref<1x4x8x8xbf16, #tpu.memory_space<vmem>>, vector<1x1x8x8xbf16>
    %71 = vector.shape_cast %70 : vector<1x1x8x8xbf16> to vector<8x8xbf16>
    %72 = vector.shape_cast %69 : vector<8x8xbf16> to vector<1x1x8x8xbf16>
    tpu.vector_store %arg9[%c0_35, %c1_36, %c0_37, %c0_38], %72 {strides = array<i32>} : memref<1x4x8x8xbf16, #tpu.memory_space<vmem>>, vector<1x1x8x8xbf16>,
    %73 = vector.extract_strided_slice %40 {offsets = [0, 16], sizes = [8, 8], strides = [1, 1]} : vector<8x32xf32> to vector<8x8xf32>
    %74 = arith.truncf %73 : vector<8x8xf32> to vector<8x8xbf16>
    %c0_39 = arith.constant 0 : index
    %c2 = arith.constant 2 : index
    %c0_40 = arith.constant 0 : index
    %c0_41 = arith.constant 0 : index
    %75 = vector.load %arg7[%c0_39, %c2, %c0_40, %c0_41] : memref<1x4x8x8xbf16, #tpu.memory_space<vmem>>, vector<1x1x8x8xbf16>
    %76 = vector.shape_cast %75 : vector<1x1x8x8xbf16> to vector<8x8xbf16>
    %77 = vector.shape_cast %74 : vector<8x8xbf16> to vector<1x1x8x8xbf16>
    tpu.vector_store %arg7[%c0_39, %c2, %c0_40, %c0_41], %77 {strides = array<i32>} : memref<1x4x8x8xbf16, #tpu.memory_space<vmem>>, vector<1x1x8x8xbf16>,
    %78 = vector.extract_strided_slice %41 {offsets = [0, 16], sizes = [8, 8], strides = [1, 1]} : vector<8x32xf32> to vector<8x8xf32>
    %79 = arith.truncf %78 : vector<8x8xf32> to vector<8x8xbf16>
    %c0_42 = arith.constant 0 : index
    %c2_43 = arith.constant 2 : index
    %c0_44 = arith.constant 0 : index
    %c0_45 = arith.constant 0 : index
    %80 = vector.load %arg8[%c0_42, %c2_43, %c0_44, %c0_45] : memref<1x4x8x8xbf16, #tpu.memory_space<vmem>>, vector<1x1x8x8xbf16>
    %81 = vector.shape_cast %80 : vector<1x1x8x8xbf16> to vector<8x8xbf16>
    %82 = vector.shape_cast %79 : vector<8x8xbf16> to vector<1x1x8x8xbf16>
    tpu.vector_store %arg8[%c0_42, %c2_43, %c0_44, %c0_45], %82 {strides = array<i32>} : memref<1x4x8x8xbf16, #tpu.memory_space<vmem>>, vector<1x1x8x8xbf16>,
    %83 = vector.extract_strided_slice %42 {offsets = [0, 16], sizes = [8, 8], strides = [1, 1]} : vector<8x32xf32> to vector<8x8xf32>
    %84 = arith.truncf %83 : vector<8x8xf32> to vector<8x8xbf16>
    %c0_46 = arith.constant 0 : index
    %c2_47 = arith.constant 2 : index
    %c0_48 = arith.constant 0 : index
    %c0_49 = arith.constant 0 : index
    %85 = vector.load %arg9[%c0_46, %c2_47, %c0_48, %c0_49] : memref<1x4x8x8xbf16, #tpu.memory_space<vmem>>, vector<1x1x8x8xbf16>
    %86 = vector.shape_cast %85 : vector<1x1x8x8xbf16> to vector<8x8xbf16>
    %87 = vector.shape_cast %84 : vector<8x8xbf16> to vector<1x1x8x8xbf16>
    tpu.vector_store %arg9[%c0_46, %c2_47, %c0_48, %c0_49], %87 {strides = array<i32>} : memref<1x4x8x8xbf16, #tpu.memory_space<vmem>>, vector<1x1x8x8xbf16>,
    %88 = vector.extract_strided_slice %40 {offsets = [0, 24], sizes = [8, 8], strides = [1, 1]} : vector<8x32xf32> to vector<8x8xf32>
    %89 = arith.truncf %88 : vector<8x8xf32> to vector<8x8xbf16>
    %c0_50 = arith.constant 0 : index
    %c3 = arith.constant 3 : index
    %c0_51 = arith.constant 0 : index
    %c0_52 = arith.constant 0 : index
    %90 = vector.load %arg7[%c0_50, %c3, %c0_51, %c0_52] : memref<1x4x8x8xbf16, #tpu.memory_space<vmem>>, vector<1x1x8x8xbf16>
    %91 = vector.shape_cast %90 : vector<1x1x8x8xbf16> to vector<8x8xbf16>
    %92 = vector.shape_cast %89 : vector<8x8xbf16> to vector<1x1x8x8xbf16>
    tpu.vector_store %arg7[%c0_50, %c3, %c0_51, %c0_52], %92 {strides = array<i32>} : memref<1x4x8x8xbf16, #tpu.memory_space<vmem>>, vector<1x1x8x8xbf16>,
    %93 = vector.extract_strided_slice %41 {offsets = [0, 24], sizes = [8, 8], strides = [1, 1]} : vector<8x32xf32> to vector<8x8xf32>
    %94 = arith.truncf %93 : vector<8x8xf32> to vector<8x8xbf16>
    %c0_53 = arith.constant 0 : index
    %c3_54 = arith.constant 3 : index
    %c0_55 = arith.constant 0 : index
    %c0_56 = arith.constant 0 : index
    %95 = vector.load %arg8[%c0_53, %c3_54, %c0_55, %c0_56] : memref<1x4x8x8xbf16, #tpu.memory_space<vmem>>, vector<1x1x8x8xbf16>
    %96 = vector.shape_cast %95 : vector<1x1x8x8xbf16> to vector<8x8xbf16>
    %97 = vector.shape_cast %94 : vector<8x8xbf16> to vector<1x1x8x8xbf16>
    tpu.vector_store %arg8[%c0_53, %c3_54, %c0_55, %c0_56], %97 {strides = array<i32>} : memref<1x4x8x8xbf16, #tpu.memory_space<vmem>>, vector<1x1x8x8xbf16>,
    %98 = vector.extract_strided_slice %42 {offsets = [0, 24], sizes = [8, 8], strides = [1, 1]} : vector<8x32xf32> to vector<8x8xf32>
    %99 = arith.truncf %98 : vector<8x8xf32> to vector<8x8xbf16>
    %c0_57 = arith.constant 0 : index
    %c3_58 = arith.constant 3 : index
    %c0_59 = arith.constant 0 : index
    %c0_60 = arith.constant 0 : index
    %100 = vector.load %arg9[%c0_57, %c3_58, %c0_59, %c0_60] : memref<1x4x8x8xbf16, #tpu.memory_space<vmem>>, vector<1x1x8x8xbf16>
    %101 = vector.shape_cast %100 : vector<1x1x8x8xbf16> to vector<8x8xbf16>
    %102 = vector.shape_cast %99 : vector<8x8xbf16> to vector<1x1x8x8xbf16>
    tpu.vector_store %arg9[%c0_57, %c3_58, %c0_59, %c0_60], %102 {strides = array<i32>} : memref<1x4x8x8xbf16, #tpu.memory_space<vmem>>, vector<1x1x8x8xbf16>,
    return
  }
  func.func @transform_0(%arg0: i32, %arg1: i32) -> (i32, i32, i32) {
    %c0_i32 = arith.constant 0 : i32
    %c0_i32_0 = arith.constant 0 : i32
    return %arg0, %arg1, %c0_i32 : i32, i32, i32
  }
  func.func @transform_1(%arg0: i32, %arg1: i32) -> (i32, i32) {
    %c0_i32 = arith.constant 0 : i32
    %c0_i32_0 = arith.constant 0 : i32
    %c0_i32_1 = arith.constant 0 : i32
    return %c0_i32, %c0_i32_0 : i32, i32
  }
  func.func @transform_2(%arg0: i32, %arg1: i32) -> (i32, i32) {
    %c0_i32 = arith.constant 0 : i32
    %c0_i32_0 = arith.constant 0 : i32
    %c0_i32_1 = arith.constant 0 : i32
    return %c0_i32, %c0_i32_0 : i32, i32
  }
  func.func @transform_3(%arg0: i32, %arg1: i32) -> (i32, i32) {
    %c0_i32 = arith.constant 0 : i32
    %c0_i32_0 = arith.constant 0 : i32
    %c0_i32_1 = arith.constant 0 : i32
    return %c0_i32, %c0_i32_0 : i32, i32
  }
  func.func @transform_4(%arg0: i32, %arg1: i32) -> (i32, i32) {
    %c0_i32 = arith.constant 0 : i32
    %c0_i32_0 = arith.constant 0 : i32
    %c0_i32_1 = arith.constant 0 : i32
    return %c0_i32, %c0_i32_0 : i32, i32
  }
  func.func @transform_5(%arg0: i32, %arg1: i32) -> (i32, i32, i32, i32) {
    %c0_i32 = arith.constant 0 : i32
    %c0_i32_0 = arith.constant 0 : i32
    %c0_i32_1 = arith.constant 0 : i32
    return %arg0, %c0_i32, %arg1, %c0_i32_0 : i32, i32, i32, i32
  }
  func.func @transform_6(%arg0: i32, %arg1: i32) -> (i32, i32, i32, i32) {
    %c0_i32 = arith.constant 0 : i32
    %c0_i32_0 = arith.constant 0 : i32
    %c0_i32_1 = arith.constant 0 : i32
    return %arg0, %c0_i32, %arg1, %c0_i32_0 : i32, i32, i32, i32
  }
  func.func @transform_7(%arg0: i32, %arg1: i32) -> (i32, i32, i32, i32) {
    %c0_i32 = arith.constant 0 : i32
    %c0_i32_0 = arith.constant 0 : i32
    %c0_i32_1 = arith.constant 0 : i32
    return %arg0, %c0_i32, %arg1, %c0_i32_0 : i32, i32, i32, i32
  }
}

</mosaic_0001>

<bundles_post_ra>
// kernel: tpu_custom_call.1
= control target key start
LH: loop header
LB: loop body
LE: loop exit
PB: predicated region body
PF: predicated region fallthrough
CT: control target
= control target key end

     0   :  { %s1454_s0 = inlined_call_operand.hbm [shape: f32[2,16,32], index: 0, kind: input, shape index: {}]   ;;  %s1455_s1 = inlined_call_operand.vmem [shape: f32[1,32], index: 1, kind: input, shape index: {}]   ;;  %s1456_s2 = inlined_call_operand.vmem [shape: f32[1,32], index: 2, kind: input, shape index: {}]   ;;  %s1457_s3 = inlined_call_operand.hbm [shape: bf16[32,96], index: 3, kind: input, shape index: {}]   ;;  %s1458_s4 = inlined_call_operand.vmem [shape: f32[1,96], index: 4, kind: input, shape index: {}]   ;;  %s1459_s5 = inlined_call_operand.vmem [shape: bf16[2,4,16,8], index: 5, kind: output, shape index: {0}]   ;;  %s1460_s6 = inlined_call_operand.vmem [shape: bf16[2,4,16,8], index: 6, kind: output, shape index: {1}]   ;;  %s1461_s7 = inlined_call_operand.vmem [shape: bf16[2,4,16,8], index: 7, kind: output, shape index: {2}]  }
   0x1   :  { %1467 = sst [smem:[#allocation13_spill]] %s1457_s3 }
   0x2   :  { %1468 = sst [smem:[#allocation14_spill]] %s1459_s5 }
   0x3   :  { %1469 = sst [smem:[#allocation15_spill]] %s1460_s6 }
   0x4   :  { %1470 = sst [smem:[#allocation16_spill]] %s1461_s7 }
   0x5   :  { %13 = vsyncpa [#allocation3], 0 }
   0x6   :  { %15 = vsyncpa [#allocation3 + $0x1], 0 }
   0x7   :  { %16 = vsyncpa [#allocation5], 0  ;;  %s1180_s24 = smov 0   ;;  %s1182_s25 = smov 0  }
   0x8   :  { %s1184_s26 = smov 0   ;;  %s1186_s27 = smov 0  }
   0x9   :  { %s1188_s28 = smov 0   ;;  %s1190_s29 = smov 0  }
   0xa   :  { %s1192_s30 = smov 0   ;;  %s1194_s8 = smov 0  }
   0xb LB: > { %1471 = sst [smem:[#allocation11_spill]] %s1105_s27  ;;  %s837_s9 = sadd.s32 4294967295, %s1121_s8   ;;  %s1121_s8 = sphi %s1194_s8, %s22_s8   ;;  %s1117_s30 = sphi %s1192_s30, %s1497_s30   ;;  %s1113_s29 = sphi %s1190_s29, %s1496_s29   ;;  %s1109_s28 = sphi %s1188_s28, %s1495_s28   ;;  %s1105_s27 = sphi %s1186_s27, %s1494_s27   ;;  %s1101_s26 = sphi %s1184_s26, %s1493_s26   ;;  %s1097_s25 = sphi %s1182_s25, %s1492_s25   ;;  %s1093_s24 = sphi %s1180_s24, %s1491_s24  }
   0xc   : > { %p56_p0 = scmp.ne.s32.totalorder %s1097_s25, %s1093_s24  ;;  %p1222_p1 = scmp.eq.s32.totalorder %s837_s9, 0 }
   0xd   : > { %p839_p2 = scmp.ge.s32.totalorder %s1121_s8, 1  ;;  %p235_p3 = scmp.lt.s32.totalorder %s1121_s8, 5 }
   0xe   : > { %s1472_s10 = scalar_select %p1222_p1, 1, 0 }
   0xf   : > { %p1230_p4 = por %p1222_p1, %p56_p0  ;;  %p1234_p5 = pnand %p839_p2, %p235_p3 }
  0x10   : > { %s1123_s13 = smov [#allocation4]   ;;  %s1476_s3 = sld [smem:[#allocation13_spill]] }
  0x11   : > { %s1473_s11 = scalar_select %p1230_p4, 1, 0 }
  0x12   : > { %s1474_s12 = scalar_select %p1234_p5, 1, 0 }
  0x13   : > { %s253_s14 = sshll.u32 %s1123_s13, 4  ;;  %p898_p6 = pneg %p1234_p5  ;;  %s254_s14 = int_to_ptr.vmem [resolvable:$true] %s253_s14 }
  0x15   : > { %p1242_p7 = pnand %p898_p6, %p1222_p1 }
  0x16   : > { %s993_s18 = scalar_lea.hbm %s1476_s3, 256 }
  0x17   : > { %p994_p8 = scmp.ne.s32.totalorder %s1476_s3, %s993_s18  ;;  %p995_p9 = pneg %p1242_p7 }
  0x18   : > { %p1000_p12 = scmp.lt.u32.totalorder %s993_s18, %s1476_s3 }
  0x19   : > { %p996_p10 = pnand %p995_p9, %p994_p8 }
  0x1b   : > { %p997_p11 = pneg %p996_p10 }
  0x1d   : > { %p1002_p13 = pnand %p1000_p12, %p997_p11 }
  0x1f   : > { %1005 = shalt.err (!%p1002_p13)
}
  0x20   : > { %s1006_s23 = scalar_lea.vmem %s254_s14, 256  ;;  %p1014_p6 = scmp.lt.s32.totalorder %s254_s14, %s254_s14 }
  0x21   : > { %p1007_p0 = scmp.ne.s32.totalorder %s254_s14, %s1006_s23  ;;  %p1015_p1 = scmp.lt.s32.totalorder %s1006_s23, %s1006_s23 }
  0x23   : > { %p1009_p2 = pnand %p1007_p0, %p995_p9  ;;  %p1016_p4 = por %p1015_p1, %p1014_p6 }
  0x25   : > { %p1010_p3 = pneg %p1009_p2 }
  0x27   : > { %p1017_p5 = pnand %p1016_p4, %p1010_p3 }
  0x29   : > { %1020 = shalt.err (!%p1017_p5)
}
  0x2a   : > { %s1124_s24 = smov 64   ;;  %s1125_s13 = smov 4  }
  0x2b   : > { %901 = dma.hbm_to_vmem [thread:$0]  (!%p1242_p7), %s1476_s3, 256, %s254_s14, [#allocation5], %s1124_s24, %s1124_s24, %s1125_s13  }
  0x2c   : > { %p166_p1 = scmp.eq.s32.totalorder %s837_s9, 3  ;;  %s31_s18 = sadd.s32 1, %s1113_s29 }
  0x2d   : > { %p32_p4 = scmp.ge.s32.totalorder %s31_s18, 2  ;;  %s34_s19 = sadd.s32 1, %s1117_s30 }
  0x2e   : > { %p50_p5 = scmp.ne.s32.totalorder %s1101_s26, %s1097_s25  ;;  %p51_p8 = scmp.eq.s32.totalorder %s1121_s8, 0 }
  0x2f   : > { %s1499_s18 = smov (%p32_p4, %s31_s18), 0  ;;  %s1501_s19 = smov (!%p32_p4, %s34_s19), %s1117_s30 }
  0x30   : > { %1477 = sst [smem:[#allocation12_spill]] %s1499_s18  ;;  %s39_s15 = ssub.s32 %s1113_s29, %s1499_s18 }
  0x31   : > { %s43_s20 = sadd.s32 1, %s1101_s26  ;;  %p36_p9 = scmp.ge.s32.totalorder %s1501_s19, 2 }
  0x32   : > { %p1275_p7 = por %p166_p1, %p50_p5  ;;  %p1279_p10 = por %p51_p8, %p50_p5 }
  0x33   : > { %s270_s21 = sand.u32 1, %s1101_s26   ;;  %s1503_s19 = smov (%p36_p9, %s1501_s19), 0 }
  0x34   : > { %p907_p11 = scmp.lt.s32.totalorder %s1121_s8, 4  ;;  %s842_s22 = sshll.u32 %s270_s21, 3 }
  0x35   : > { %s38_s23 = ssub.s32 %s1117_s30, %s1503_s19  ;;  %s843_s13 = sshll.u32 %s1117_s30, 1 }
  0x36   : > { %s40_s24 = sor.u32 %s39_s15, %s38_s23  ;;  %s279_s16 = sadd.s32 %s1113_s29, %s843_s13 }
  0x37   : > { %p41_p12 = scmp.eq.s32.totalorder %s40_s24, 0  ;;  %s844_s17 = sshll.u32 %s279_s16, 7 }
  0x38   : > { %s274_s3 = scalar_lea.vmem [#allocation2], %s842_s22  ;;  %s1297_s27 = scalar_lea.hbm %s1454_s0, %s844_s17 }
  0x39   : > { %s283_s18 = sshll.u32 %s274_s3, 4  ;;  %p1305_p13 = pnand %p907_p11, %p1279_p10  ;;  %s1299_s18 = int_to_ptr.vmem [resolvable:$true] %s283_s18 }
  0x3a   : > { %s1292_s7 = scalar_select %p41_p12, %s1101_s26, %s43_s20  }
  0x3b   : > { %s271_s3 = scalar_lea.sflag [#allocation3], %s270_s21  ;;  %s1021_s20 = scalar_lea.hbm %s1297_s27, 128 }
  0x3c   : > { %p1022_p0 = scmp.ne.s32.totalorder %s1297_s27, %s1021_s20  ;;  %p1023_p2 = pneg %p1305_p13 }
  0x3d   : > { %s1026_s9 = scalar_lea.hbm %s1454_s0, 512  ;;  %p1027_p1 = scmp.lt.u32.totalorder %s1297_s27, %s1454_s0 }
  0x3e   : > { %p1024_p3 = pnand %p1023_p2, %p1022_p0  ;;  %p1028_p4 = scmp.lt.u32.totalorder %s1026_s9, %s1021_s20 }
  0x3f   : > { %p1030_p8 = scmp.lt.u32.totalorder %s1021_s20, %s1297_s27 }
  0x40   : > { %p1025_p6 = pneg %p1024_p3  ;;  %p1029_p5 = por %p1028_p4, %p1027_p1 }
  0x42   : > { %p1031_p9 = por %p1030_p8, %p1029_p5 }
  0x44   : > { %p1032_p10 = pnand %p1031_p9, %p1025_p6 }
  0x46   : > { %1035 = shalt.err (!%p1032_p10)
}
  0x47   : > { %s1036_s21 = scalar_lea.vmem %s1299_s18, 128  ;;  %s1126_s24 = smov [#allocation2]  }
  0x48   : > { %p1037_p11 = scmp.ne.s32.totalorder %s1299_s18, %s1036_s21  ;;  %s1041_s13 = sshll.u32 %s1126_s24, 4  ;;  %s1042_s13 = int_to_ptr.vmem [resolvable:$false] %s1041_s13 }
  0x49   : > { %s1043_s16 = scalar_lea.vmem %s1042_s13, 256  ;;  %p1044_p3 = scmp.lt.s32.totalorder %s1299_s18, %s1042_s13 }
  0x4a   : > { %p1039_p12 = pnand %p1037_p11, %p1023_p2  ;;  %p1045_p1 = scmp.lt.s32.totalorder %s1043_s16, %s1036_s21 }
  0x4c   : > { %p1040_p0 = pneg %p1039_p12  ;;  %p1046_p4 = por %p1045_p1, %p1044_p3 }
  0x4e   : > { %p1047_p5 = pnand %p1046_p4, %p1040_p0 }
  0x50   : > { %1050 = shalt.err (!%p1047_p5)
}
  0x51   : > { %905 = dma.hbm_to_vmem [thread:$0]  (!%p1305_p13), %s1297_s27, 128, %s1299_s18, %s271_s3  }
  0x52   : > { %p1481_p6 = scmp.ne.s32.totalorder %s1474_s12, 0 }
  0x53   : > { %s1337_s17 = sand.u32 (!%p1481_p6), 1, %s1097_s25   ;;  %p1482_p2 = scmp.ne.s32.totalorder (!%p1481_p6), %s1473_s11, 0 }
  0x54   : > { %292 = sbr.rel (%p1481_p6) target bundleno = 801 (0x321), region = 40  ;;  %s846_s20 = sshll.u32 (!%p1481_p6), %s1337_s17, 3 }
  0x55   : > { %s295_s5 = scalar_lea.sflag (!%p1481_p6), [#allocation3], %s1337_s17  ;;  %s298_s6 = scalar_lea.vmem (!%p1481_p6), [#allocation2], %s846_s20 }
  0x5b   : > { %1084 = dma.done.wait (%p1482_p2), %s295_s5, 128  }
  0x5c   : > { %1086 = vsyncadd (%p1482_p2), %s295_s5, 4294967168  ;;  %p1483_p8 = scmp.ne.s32.totalorder %s1472_s10, 0 }
  0x5e   : > { %1088 = dma.done.wait (%p1483_p8), [#allocation5], 256  }
  0x5f   : > { %1090 = vsyncadd (%p1483_p8), [#allocation5], 4294967040  ;;  %vm344_vm0 = vcmask 261120   ;;  %v341_v0 = vld [vmem:[%s298_s6] sm:$0xff]  ;;  %v989_v7 = vld [vmem:[#allocation4] sm:$0xff]   ;;  %v1127_v8 = vmov 0.0  }
  0x60   : > { %v345_v1 = vsel %vm344_vm0, %v341_v0, 0.0  ;;  %884 = vmatprep.subr.bf16.mxu0 %v1127_v8  ;;  %vm1128_vm1 = vmmov 0   ;;  %v990_v9 = vld [vmem:[#allocation4 + $0x8] sm:$0xff]   ;;  %v851_v14 = vld [vmem:[%s1455_s1] ss:$0 sm:$0xff]  ;;  %s1362_s3 = sshll.u32 %s1337_s17, 4 }
  0x61   : > { %346 = vadd.xlane.f32.xlu0 %v345_v1  ;;  %888 = vmatprep.mubr.msk.bf16.mxu0 %vm1128_vm1, %v1127_v8  ;;  %v852_v16 = vld [vmem:[%s1456_s2] ss:$0 sm:$0xff]  ;;  %vm442_vm2 = vcmask 60416   ;;  %s1129_s9 = smov 96   ;;  %s1130_s22 = smov 120  }
  0x62   : > { %885 = vmatpush3.bf16.msra.mxu0 %v989_v7  ;;  %v853_v20 = vld [vmem:[%s1458_s4] ss:$0 sm:$0xff]  ;;  %s1365_s23 = scalar_lea.vmem [#allocation6], %s1362_s3  ;;  %s1131_s21 = smov 64  }
  0x63   : > { %886 = vmatprep.subr.bf16.mxu0 %v1127_v8  ;;  %s1132_s24 = smov 72   ;;  %s1133_s13 = smov 88  }
  0x64   : > { %s1134_s16 = smov 56   ;;  %s1135_s17 = smov 80  }
  0x65   : > { %s1136_s20 = smov 48   ;;  %s1137_s5 = smov 112  }
  0x66   : > { %887 = vmatpush3.bf16.msra.mxu0 %v990_v9  ;;  %s1138_s6 = smov 104   ;;  %s1139_s27 = smov 40  }
  0x67   : > { %s1370_s10 = scalar_lea.vmem [#allocation7], %s1362_s3  ;;  %s1377_s11 = scalar_lea.vmem [#allocation8], %s1362_s3 }
  0x68   : > { %s1484_s12 = sld [smem:[#allocation11_spill]] (%p1275_p7)  ;;  %s871_s18 = sshll.u32 (%p1275_p7), %s1109_s28, 3 }
  0x6e   : > { %s520_s15 = sadd.s32 (%p1275_p7), %s1484_s12, %s871_s18 }
  0x6f   : > { %s872_s3 = sshll.u32 (%p1275_p7), %s520_s15, 2 }
  0xee   : > { %v347_v2 = vpop.xlane.xlu0 %346 }
  0xef   : > { %v349_v3 = vmul.f32 0.03125, %v347_v2 }
  0xf1   : > { %v350_v4 = vsub.f32 %v341_v0, %v349_v3 }
  0xf3   : > { %v351_v5 = vmul.f32 %v350_v4, %v350_v4 }
  0xf5   : > { %v352_v6 = vsel %vm344_vm0, %v351_v5, 0.0 }
  0xf6   : > { %353 = vadd.xlane.f32.xlu0 %v352_v6 }
 0x183   : > { %v354_v10 = vpop.xlane.xlu0 %353 }
 0x184   : > { %v355_v11 = vmul.f32 0.03125, %v354_v10 }
 0x186   : > { %v356_v12 = vadd.f32 1e-05, %v355_v11 }
 0x188   : > { %991 = vrsqrt.f32 %v356_v12 }
 0x192   : > { %v992_v13 = vpop.eup %991 }
 0x193   : > { %v358_v15 = vmul.f32 %v992_v13, %v350_v4 }
 0x195   : > { %v365_v17 = vmul.f32 %v851_v14, %v358_v15 }
 0x197   : > { %v372_v18 = vadd.f32 %v852_v16, %v365_v17 }
 0x199   : > { %v373_v19 = vpack.c.bf16 %v372_v18, %v372_v18 }
 0x19b   : > { %889 = vmatmul.mubr.msk.bf16.vlgmr.msra.gmra.mrb[0].mxu0 %vm344_vm0, %v373_v19 }
 0x26e   : > { %v434_v21 = vpop.f32.mrb[0].mxu0 }
 0x26f   : > { %v435_v22 = vadd.f32 %v853_v20, %v434_v21  ;;  %v890_v23 = vpop.f32.mrb[1].mxu0 }
 0x270   : > { %v437_v24 = vpop.f32.mrb[2].mxu0 }
 0x271   : > { %v440_v25 = vmul.f32 0.35355338, %v435_v22  ;;  %v879_v26 = vpack.c.bf16 %v435_v22, %v435_v22  ;;  %v891_v27 = vpop.f32.mrb[3].mxu0 }
 0x273   : > { %v441_v28 = vpack.c.bf16 %v440_v25, %v440_v25  ;;  %448 = vrot.lane.b32.xlu1 %v879_v26, %s1129_s9 }
 0x275   : > { %459 = vrot.lane.b32.xlu0 %v441_v28, %s1130_s22  ;;  %443 = vst.msk [vmem:[%s1365_s23] sm:$0xf] %vm442_vm2, %v441_v28 }
 0x277   : > { %452 = vrot.lane.b32.xlu1 %v879_v26, %s1131_s21  ;;  %s1485_s21 = sld [smem:[#allocation14_spill]] (%p1275_p7) }
 0x279   : > { %494 = vrot.lane.b32.xlu0 %v879_v26, %s1132_s24 }
 0x27b   : > { %464 = vrot.lane.b32.xlu1 %v879_v26, %s1133_s13 }
 0x27c   : > { %v538_v40 = vld [vmem:[%s1365_s23] sm:$0xf] (%p1275_p7) }
 0x27d   : > { %s522_s24 = scalar_lea.vmem (%p1275_p7), %s1485_s21, %s872_s3 }
 0x27e   : > { %539 = vst [vmem:[%s522_s24] sm:$0xf] (%p1275_p7), %v538_v40 }
 0x27f   : > { %469 = vrot.lane.b32.xlu1 %v879_v26, %s1134_s16 }
 0x283   : > { %479 = vrot.lane.b32.xlu1 %v879_v26, %s1135_s17 }
 0x287   : > { %484 = vrot.lane.b32.xlu1 %v879_v26, %s1136_s20 }
 0x28b   : > { %474 = vrot.lane.b32.xlu1 %v441_v28, %s1137_s5 }
 0x28f   : > { %489 = vrot.lane.b32.xlu1 %v441_v28, %s1138_s6 }
 0x293   : > { %499 = vrot.lane.b32.xlu1 %v879_v26, %s1139_s27 }
 0x2e5   : > { %v449_v29 = vpop.permute.xlu1 %448 }
 0x2e6   : > { %451 = vst.msk [vmem:[%s1370_s10] sm:$0xf] %vm442_vm2, %v449_v29 }
 0x2e7   : > { %v460_v30 = vpop.permute.xlu0 %459 }
 0x2e8   : > { %859 = vst.msk [vmem:[%s1365_s23 + $0x4] sm:$0xf] %vm442_vm2, %v460_v30 }
 0x2e9   : > { %v453_v31 = vpop.permute.xlu1 %452 }
 0x2ea   : > { %455 = vst.msk [vmem:[%s1377_s11] sm:$0xf] %vm442_vm2, %v453_v31 }
 0x2eb   : > { %v495_v32 = vpop.permute.xlu0 %494 }
 0x2ec   : > { %866 = vst.msk [vmem:[%s1370_s10 + $0xc] sm:$0xf] %vm442_vm2, %v495_v32 }
 0x2ed   : > { %v465_v33 = vpop.permute.xlu1 %464 }
 0x2ee   : > { %860 = vst.msk [vmem:[%s1370_s10 + $0x4] sm:$0xf] %vm442_vm2, %v465_v33 }
 0x2ef   : > { %v540_v41 = vld [vmem:[%s1365_s23 + $0x4] sm:$0xf] (%p1275_p7) }
 0x2f0   : > { %541 = vst [vmem:[%s522_s24 + $0x8] sm:$0xf] (%p1275_p7), %v540_v41 }
 0x2f1   : > { %v470_v34 = vpop.permute.xlu1 %469 }
 0x2f2   : > { %861 = vst.msk [vmem:[%s1377_s11 + $0x4] sm:$0xf] %vm442_vm2, %v470_v34 }
 0x2f5   : > { %v480_v35 = vpop.permute.xlu1 %479 }
 0x2f6   : > { %863 = vst.msk [vmem:[%s1370_s10 + $0x8] sm:$0xf] %vm442_vm2, %v480_v35 }
 0x2f9   : > { %v485_v36 = vpop.permute.xlu1 %484 }
 0x2fa   : > { %864 = vst.msk [vmem:[%s1377_s11 + $0x8] sm:$0xf] %vm442_vm2, %v485_v36 }
 0x2fd   : > { %v475_v37 = vpop.permute.xlu1 %474 }
 0x2fe   : > { %862 = vst.msk [vmem:[%s1365_s23 + $0x8] sm:$0xf] %vm442_vm2, %v475_v37 }
 0x300   : > { %518 = sbr.rel (!%p1275_p7) target bundleno = 779 (0x30b), region = 52 }
 0x301   : > { %v490_v38 = vpop.permute.xlu1 %489 }
 0x302   : > { %865 = vst.msk [vmem:[%s1365_s23 + $0xc] sm:$0xf] %vm442_vm2, %v490_v38 }
 0x305   : > { %v500_v39 = vpop.permute.xlu1 %499  ;;  %v542_v42 = vld [vmem:[%s1365_s23 + $0x8] sm:$0xf] (%p1275_p7) }
 0x306   : > { %867 = vst.msk [vmem:[%s1377_s11 + $0xc] sm:$0xf] %vm442_vm2, %v500_v39  ;;  %543 = vst [vmem:[%s522_s24 + $0x10] sm:$0xf] (%p1275_p7), %v542_v42 }
 0x309   : > { %v544_v43 = vld [vmem:[%s1365_s23 + $0xc] sm:$0xf] }
 0x30a   : > { %545 = vst [vmem:[%s522_s24 + $0x18] sm:$0xf] %v544_v43 }
 0x30b PF: > { %576 = sbr.rel (!%p1275_p7) target bundleno = 790 (0x316), region = 93  ;;  %s1486_s13 = sld [smem:[#allocation11_spill]] (%p1275_p7)  ;;  %v596_v44 = vld [vmem:[%s1370_s10] sm:$0xf] (%p1275_p7)  ;;  %v598_v45 = vld [vmem:[%s1370_s10 + $0x4] sm:$0xf] (%p1275_p7) }
 0x30c   : > { %s873_s23 = sshll.u32 (%p1275_p7), %s1109_s28, 3  ;;  %v600_v46 = vld [vmem:[%s1370_s10 + $0x8] sm:$0xf] (%p1275_p7)  ;;  %v602_v47 = vld [vmem:[%s1370_s10 + $0xc] sm:$0xf] (%p1275_p7)  ;;  %s1487_s6 = sld [smem:[#allocation15_spill]] (%p1275_p7) }
 0x311   : > { %s578_s16 = sadd.s32 (%p1275_p7), %s1486_s13, %s873_s23 }
 0x312   : > { %s874_s17 = sshll.u32 %s578_s16, 2 }
 0x313   : > { %s580_s27 = scalar_lea.vmem %s1487_s6, %s874_s17 }
 0x314   : > { %597 = vst [vmem:[%s580_s27] sm:$0xf] %v596_v44  ;;  %599 = vst [vmem:[%s580_s27 + $0x8] sm:$0xf] %v598_v45 }
 0x315   : > { %601 = vst [vmem:[%s580_s27 + $0x10] sm:$0xf] %v600_v46  ;;  %603 = vst [vmem:[%s580_s27 + $0x18] sm:$0xf] %v602_v47 }
 0x316 PF: > { %634 = sbr.rel (!%p1275_p7) target bundleno = 801 (0x321), region = 134  ;;  %s1488_s12 = sld [smem:[#allocation11_spill]] (%p1275_p7)  ;;  %v654_v48 = vld [vmem:[%s1377_s11] sm:$0xf] (%p1275_p7)  ;;  %v656_v49 = vld [vmem:[%s1377_s11 + $0x4] sm:$0xf] (%p1275_p7) }
 0x317   : > { %s875_s10 = sshll.u32 (%p1275_p7), %s1109_s28, 3  ;;  %v658_v50 = vld [vmem:[%s1377_s11 + $0x8] sm:$0xf] (%p1275_p7)  ;;  %v660_v51 = vld [vmem:[%s1377_s11 + $0xc] sm:$0xf] (%p1275_p7)  ;;  %s1489_s22 = sld [smem:[#allocation16_spill]] (%p1275_p7) }
 0x31c   : > { %s636_s18 = sadd.s32 (%p1275_p7), %s1488_s12, %s875_s10 }
 0x31d   : > { %s876_s15 = sshll.u32 %s636_s18, 2 }
 0x31e   : > { %s638_s21 = scalar_lea.vmem %s1489_s22, %s876_s15 }
 0x31f   : > { %655 = vst [vmem:[%s638_s21] sm:$0xf] %v654_v48  ;;  %657 = vst [vmem:[%s638_s21 + $0x8] sm:$0xf] %v656_v49 }
 0x320   : > { %659 = vst [vmem:[%s638_s21 + $0x10] sm:$0xf] %v658_v50  ;;  %661 = vst [vmem:[%s638_s21 + $0x18] sm:$0xf] %v660_v51 }
 0x321 PF: > { %s22_s8 = sadd.s32 1, %s1121_s8   ;;  %s1490_s14 = sld [smem:[#allocation12_spill]] }
 0x322   : > { %p19_p7 = scmp.ge.s32.totalorder %s22_s8, 6   ;;  %s1491_s24 = smov %s1097_s25 }
 0x323   : > { %s1492_s25 = smov %s1101_s26  ;;  %s1493_s26 = smov %s1292_s7 }
 0x324   : > { %s1494_s27 = smov %s1113_s29  ;;  %s1495_s28 = smov %s1117_s30 }
 0x325   : > { %s1497_s30 = smov %s1503_s19  ;;  %21 = sbr.rel (!%p19_p7) target bundleno = 11 (0xb), region = 240 }
 0x327   : > { %s1496_s29 = smov %s1490_s14 }
 0x32c   :  { %716 = vsyncpa [#allocation3], 1 }
 0x32d   :  { %718 = vsyncpa [#allocation3 + $0x1], 1 }
 0x32e   :  { %719 = vsyncpa [#allocation5], 1 }

</bundles_post_ra>
